<compile_context>
chip_gen: v6e
topology: v6e:2x2x1
jax: 0.10.0
libtpu: 0.0.40
codegen_flags: <defaults>
</compile_context>

<pallas_src>
import functools
import math

import jax
import jax.numpy as jnp
from jax.experimental import pallas as pl
from jax.experimental.pallas import tpu as pltpu


def _unitnorm_kernel(x_ref, o_ref, *, multiplier):
    # x_ref: (TB, D) tile in VMEM.  Per-row reduction + conditional rescale.
    x = x_ref[...]
    xf = x.astype(jnp.float32)
    sq = jnp.sum(xf * xf, axis=-1, keepdims=True)                 # (TB, 1) f32
    # Squared-norm compare; rsqrt goes to the (otherwise idle) EUP slot.
    inv_norm = jax.lax.rsqrt(jnp.maximum(sq, jnp.float32(1e-30)))
    scale = jnp.where(sq > jnp.float32(multiplier * multiplier),
                      jnp.float32(multiplier) * inv_norm,
                      jnp.float32(1.0))
    # Apply the rescale in the native dtype (keeps bf16 packed through vregs).
    o_ref[...] = (x * scale.astype(x.dtype)).astype(o_ref.dtype)


def unit_norm(x, max_power=1, eps=1e-05):
    """Pallas implementation of UnitNorm.forward.  x: (B, C, H, W) or any (B, ...).

    NOTE: `eps` is accepted only for API parity with the PyTorch module, which
    also never uses it in forward().
    """
    x_shape = x.shape
    b = x_shape[0]
    d = math.prod(x_shape[1:]) if len(x_shape) > 1 else 1
    x2d = x.reshape(b, d)

    # Pure-Python threshold: max_power * sqrt(D).
    multiplier = float(max_power) * math.sqrt(float(d))

    itemsize = jnp.dtype(x.dtype).itemsize
    # Sublane packing: 8 rows/vreg for 32-bit, 16 for bf16, 32 for int8/fp8.
    sub = max(8, 32 // itemsize)
    # Target ~2 MiB per input block: big enough to amortize per-step overhead,
    # small enough that double-buffered in+out blocks fit every generation's
    # scoped-VMEM defaults (v5e 16 MiB, v6e/v7x 32 MiB).
    target_block_bytes = 2 * 1024 * 1024
    rows = max(sub, target_block_bytes // max(1, d * itemsize))
    tb = (rows // sub) * sub
    if b <= tb:
        tb = b  # one block covering the whole batch (full-dim block is legal)
    grid = (pl.cdiv(b, tb),)

    kernel = functools.partial(_unitnorm_kernel, multiplier=multiplier)

    out2d = pl.pallas_call(
        kernel,
        out_shape=jax.ShapeDtypeStruct((b, d), x.dtype),
        grid_spec=pltpu.PrefetchScalarGridSpec(
            num_scalar_prefetch=0,
            grid=grid,
            # Last block dim is the full row D (lane-dense whenever D % 128 == 0,
            # which holds for typical H*W; ragged D still compiles since the
            # block equals the full array dim).
            in_specs=[pl.BlockSpec((tb, d), lambda i: (i, 0))],
            out_specs=pl.BlockSpec((tb, d), lambda i: (i, 0)),
        ),
        compiler_params=pltpu.CompilerParams(
            dimension_semantics=("parallel",),   # rows are independent; lets v7x
            vmem_limit_bytes=32 * 1024 * 1024,   # shard the grid over both TCs
        ),
        # Every element of every in-bounds block is overwritten -> safe to alias.
        input_output_aliases={0: 0},
    )(x2d)

    return out2d.reshape(x_shape)


def _reference(x, max_power=1):
    """Pure-JAX reference mirroring the PyTorch forward."""
    x_shape = x.shape
    b = x_shape[0]
    x2d = x.reshape(b, -1).astype(jnp.float32)
    d = x2d.shape[1]
    multiplier = max_power * jnp.sqrt(jnp.float32(d))
    norm = jnp.linalg.norm(x2d, axis=1, keepdims=True)
    scale = jnp.where(norm > multiplier, multiplier / norm, 1.0)
    return (x2d * scale).reshape(x_shape).astype(x.dtype)


if __name__ == "__main__":
    key = jax.random.PRNGKey(0)
    # Small NCHW input consistent with an autoencoder feature map.
    B, C, H, W = 2, 4, 16, 16
    # Scale up so rows exceed the multiplier (sqrt(1024) = 32).
    x = 5.0 * jax.random.normal(key, (B, C, H, W), dtype=jnp.float32)

    # Compute the reference before running the (aliased) kernel.
    ref = _reference(x, max_power=1)
    out = jax.block_until_ready(unit_norm(x, max_power=1))
    assert out.shape == x.shape and out.dtype == x.dtype
    assert jnp.allclose(out, ref, atol=1e-4, rtol=1e-4), "f32 mismatch vs reference"

    # bf16 path: norm in f32, rescale applied in packed bf16.
    xb = x.astype(jnp.bfloat16)
    refb = _reference(xb, max_power=1)
    outb = jax.block_until_ready(unit_norm(xb, max_power=1))
    assert outb.shape == xb.shape and outb.dtype == jnp.bfloat16
    assert jnp.allclose(outb.astype(jnp.float32), refb.astype(jnp.float32),
                        atol=5e-2, rtol=5e-2), "bf16 mismatch vs reference"

    print("KERNEL_OK")
</pallas_src>

<mosaic_0001>
module attributes {stable_mosaic.version = 11 : i64} {
  func.func @_unitnorm_kernel(%arg0: i32, %arg1: memref<2x1024xf32, #tpu.memory_space<vmem>>, %arg2: memref<2x1024xf32, #tpu.memory_space<vmem>>) attributes {dimension_semantics = [#tpu.dimension_semantics<parallel>], iteration_bounds = array<i64: 1>, scalar_prefetch = 0 : i64, scratch_operands = 0 : i64, tpu.core_type = #tpu.core_type<tc>, window_params = [{transform_indices = @transform_0, window_bounds = array<i64: 2, 1024>}, {transform_indices = @transform_1, window_bounds = array<i64: 2, 1024>}]} {
    %c0 = arith.constant 0 : index
    %c0_0 = arith.constant 0 : index
    %0 = vector.load %arg1[%c0, %c0_0] : memref<2x1024xf32, #tpu.memory_space<vmem>>, vector<2x1024xf32>
    %1 = arith.mulf %0, %0 : vector<2x1024xf32>
    %cst = arith.constant dense<0.000000e+00> : vector<2xf32>
    %2 = vector.multi_reduction <add>, %1, %cst [1] : vector<2x1024xf32> to vector<2xf32>
    %3 = vector.shape_cast %2 : vector<2xf32> to vector<2x1xf32>
    %cst_1 = arith.constant 1.000000e-30 : f32
    %4 = vector.broadcast %cst_1 : f32 to vector<2x1xf32>
    %5 = arith.maximumf %3, %4 : vector<2x1xf32>
    %6 = math.rsqrt %5 : vector<2x1xf32>
    %cst_2 = arith.constant 1.024000e+03 : f32
    %7 = vector.broadcast %cst_2 : f32 to vector<2x1xf32>
    %8 = arith.cmpf ogt, %3, %7 : vector<2x1xf32>
    %cst_3 = arith.constant 3.200000e+01 : f32
    %9 = vector.broadcast %cst_3 : f32 to vector<2x1xf32>
    %10 = arith.mulf %9, %6 : vector<2x1xf32>
    %cst_4 = arith.constant 1.000000e+00 : f32
    %11 = vector.broadcast %cst_4 : f32 to vector<2x1xf32>
    %12 = arith.select %8, %10, %11 : vector<2x1xi1>, vector<2x1xf32>
    %13 = vector.broadcast %12 : vector<2x1xf32> to vector<2x1024xf32>
    %14 = arith.mulf %0, %13 : vector<2x1024xf32>
    %c0_5 = arith.constant 0 : index
    %c0_6 = arith.constant 0 : index
    %15 = vector.load %arg2[%c0_5, %c0_6] : memref<2x1024xf32, #tpu.memory_space<vmem>>, vector<2x1024xf32>
    tpu.vector_store %arg2[%c0_5, %c0_6], %14 {strides = array<i32>} : memref<2x1024xf32, #tpu.memory_space<vmem>>, vector<2x1024xf32>,
    return
  }
  func.func @transform_0(%arg0: i32) -> (i32, i32) {
    %c0_i32 = arith.constant 0 : i32
    %c0_i32_0 = arith.constant 0 : i32
    return %arg0, %c0_i32 : i32, i32
  }
  func.func @transform_1(%arg0: i32) -> (i32, i32) {
    %c0_i32 = arith.constant 0 : i32
    %c0_i32_0 = arith.constant 0 : i32
    return %arg0, %c0_i32 : i32, i32
  }
}

</mosaic_0001>

<bundles_post_ra>
// kernel: tpu_custom_call.1
= control target key start
LH: loop header
LB: loop body
LE: loop exit
PB: predicated region body
PF: predicated region fallthrough
CT: control target
= control target key end

     0   :  { %6 = vsyncpa [#allocation3], 0  ;;  %s198_s0 = inlined_call_operand.hbm [shape: f32[2,1024], index: 0, kind: input, shape index: {}, may-alias: {0,1}]   ;;  %s199_s1 = inlined_call_operand.hbm [shape: f32[2,1024], index: 1, kind: output, shape index: {}, may-alias: {0,1}]  }
   0x1   :  { %7 = vsyncpa [#allocation4], 0  ;;  %s170_s6 = smov [#allocation2]  }
   0x2   :  { %s14_s7 = sshll.u32 %s170_s6, 4  ;;  %s15_s7 = int_to_ptr.vmem [resolvable:$true] %s14_s7 }
   0x3   :  { %s134_s8 = scalar_lea.vmem %s15_s7, 256  ;;  %p139_p1 = scmp.lt.s32.totalorder %s15_s7, %s15_s7 }
   0x4   :  { %p135_p0 = scmp.ne.s32.totalorder %s15_s7, %s134_s8  ;;  %p140_p2 = scmp.lt.s32.totalorder %s134_s8, %s134_s8 }
   0x6   :  { %p141_p3 = por %p140_p2, %p139_p1 }
   0x8   :  { %p142_p4 = pnand %p141_p3, %p135_p0 }
   0xa   :  { %145 = shalt.err (!%p142_p4)
}
   0xb   :  { %17 = dma.hbm_to_vmem [thread:$0]  %s198_s0, 256, %s15_s7, [#allocation3]  }
   0xc   :  { %166 = dma.done.wait [#allocation3], 256  }
   0xd   :  { %167 = vsyncadd [#allocation3], 4294967040  ;;  %v31_v0 = vlaneseq  ;;  %v171_v1 = vmov 1983009808   ;;  %v21_v6 = vld [vmem:[#allocation2] sm:$0xff]  ;;  %v22_v7 = vld [vmem:[#allocation2 + $0x8] sm:$0xff] }
   0xe   :  { %v29_v2 = vunpack.c.l.s4 %v171_v1  ;;  %v23_v8 = vmul.f32 %v21_v6, %v21_v6  ;;  %v24_v9 = vmul.f32 %v22_v7, %v22_v7  ;;  %vm69_vm0 = vcmask 1041408   ;;  %s173_s0 = smov [#allocation5]  }
   0xf   :  { %v32_v3 = vshrl.u32 %v31_v0, 7  ;;  %v172_v37 = vmov 269488144   ;;  %s111_s11 = sshll.u32 %s173_s0, 4  ;;  %s112_s11 = int_to_ptr.vmem [resolvable:$true] %s111_s11 }
  0x10   :  { %v30_v4 = vunpack.c.0.s8 %v29_v2  ;;  %v27_v10 = vcombine.high %v23_v8, %v23_v8  ;;  %v44_v14 = vcombine.high %v24_v9, %v24_v9  ;;  %v94_v38 = vunpack.c.l.s4 %v172_v37  ;;  %s146_s12 = scalar_lea.vmem %s112_s11, 256  ;;  %p151_p6 = scmp.lt.s32.totalorder %s112_s11, %s112_s11 }
  0x11   :  { %p147_p5 = scmp.ne.s32.totalorder %s112_s11, %s146_s12  ;;  %p152_p7 = scmp.lt.s32.totalorder %s146_s12, %s146_s12 }
  0x12   :  { %v33_v5 = vsub.s32 %v30_v4, %v32_v3  ;;  %v95_v39 = vunpack.c.0.s8 %v94_v38 }
  0x13   :  { %p153_p8 = por %p152_p7, %p151_p6 }
  0x14   :  { %v34_v11 = vrot.slane %v23_v8, %v33_v5  ;;  %v41_v12 = vrot.slane %v27_v10, %v33_v5  ;;  %v51_v15 = vrot.slane %v24_v9, %v33_v5  ;;  %v58_v21 = vrot.slane %v44_v14, %v33_v5 }
  0x15   :  { %v98_v41 = vsub.s32 %v95_v39, %v32_v3  ;;  %p154_p9 = pnand %p153_p8, %p147_p5 }
  0x16   :  { %v42_v13 = vcombine.high %v34_v11, %v34_v11  ;;  %v70_v16 = vsel %vm69_vm0, %v34_v11, 0.0  ;;  %v43_v17 = vcombine.high %v41_v12, %v41_v12  ;;  %v73_v19 = vsel %vm69_vm0, %v41_v12, 0.0 }
  0x17   :  { %v59_v22 = vcombine.high %v51_v15, %v51_v15  ;;  %v77_v25 = vsel %vm69_vm0, %v51_v15, 0.0  ;;  %v60_v27 = vcombine.high %v58_v21, %v58_v21  ;;  %v81_v30 = vsel %vm69_vm0, %v58_v21, 0.0 }
  0x18   :  { %v71_v18 = vsel %vm69_vm0, %v42_v13, 0.0  ;;  %v75_v23 = vsel %vm69_vm0, %v43_v17, 0.0 }
  0x19   :  { %v72_v20 = vadd.f32 %v71_v18, %v70_v16  ;;  %v79_v28 = vsel %vm69_vm0, %v59_v22, 0.0  ;;  %v83_v32 = vsel %vm69_vm0, %v60_v27, 0.0 }
  0x1b   :  { %v74_v24 = vadd.f32 %v73_v19, %v72_v20 }
  0x1d   :  { %v76_v26 = vadd.f32 %v75_v23, %v74_v24 }
  0x1f   :  { %v78_v29 = vadd.f32 %v77_v25, %v76_v26 }
  0x21   :  { %v80_v31 = vadd.f32 %v79_v28, %v78_v29 }
  0x23   :  { %v82_v33 = vadd.f32 %v81_v30, %v80_v31 }
  0x25   :  { %v84_v34 = vadd.f32 %v83_v32, %v82_v33 }
  0x27   :  { %85 = vadd.xlane.f32.xlu0 %v84_v34 }
  0xb0   :  { %v86_v35 = vpop.xlane.xlu0 %85 }
  0xb1   :  { %v87_v36 = vmax.f32 %v86_v35, 1e-30  ;;  %vm89_vm1 = vcmp.gt.f32.partialorder %v86_v35, 1024.0 }
  0xb3   :  { %124 = vrsqrt.f32 %v87_v36 }
  0xc0   :  { %v125_v40 = vpop.eup %124 }
  0xc1   :  { %v90_v42 = vmul.f32 32.0, %v125_v40 }
  0xc3   :  { %v91_v43 = vsel %vm89_vm1, %v90_v42, 1.0 }
  0xc4   :  { %v99_v44 = vrot.slane %v91_v43, %v98_v41 }
  0xc6   :  { %v101_v45 = vmul.f32 %v99_v44, %v21_v6  ;;  %v102_v46 = vmul.f32 %v99_v44, %v22_v7 }
  0xc8   :  { %103 = vst [vmem:[#allocation5] sm:$0xff] %v101_v45  ;;  %104 = vst [vmem:[#allocation5 + $0x8] sm:$0xff] %v102_v46 }
  0xc9   :  { %157 = shalt.err (!%p154_p9)
}
  0xca   :  { %114 = dma.vmem_to_hbm [thread:$0]  %s112_s11, 256, %s199_s1, [#allocation4]  }
  0xcb   :  { %168 = dma.done.wait [#allocation4], 256  }
  0xcc   :  { %169 = vsyncadd [#allocation4], 4294967040 }
  0xcd   :  { %118 = vsyncpa [#allocation3], 1 }
  0xce   :  { %119 = vsyncpa [#allocation4], 1 }

</bundles_post_ra>
